<compile_context>
chip_gen: v7x
topology: tpu7x:2x2x1
jax: 0.10.0
libtpu: 0.0.40
codegen_flags: <defaults>
</compile_context>

<pallas_src>
import functools

import numpy as np
import jax
import jax.numpy as jnp
from jax import lax
from jax.experimental import pallas as pl
from jax.experimental.pallas import tpu as pltpu

d_model = 512


# ----------------------------------------------------------------------------
# Positional table (buffer, built once on host — same as the PyTorch __init__)
# ----------------------------------------------------------------------------
def build_pos_table(max_len: int, dm: int) -> np.ndarray:
    """angle[pos, i] = pos / 10000**(2*i/dm); row 0 stays all-zero;
    sin on even columns, cos on odd columns (rows >= 1).
    # TODO(synk): the source file's `pos_tabel[:, 0::2] = np.sin(pos_tabel[1:, 0::2])`
    # is a shape-mismatch typo (it cannot run); this implements the intended table.
    """
    i = np.arange(dm, dtype=np.float64)
    pos = np.arange(max_len, dtype=np.float64)[:, None]
    angle = pos / np.power(10000.0, 2.0 * i / dm)
    table = np.zeros((max_len, dm), dtype=np.float64)
    table[1:, 0::2] = np.sin(angle[1:, 0::2])
    table[1:, 1::2] = np.cos(angle[1:, 1::2])
    return table.astype(np.float32)


# ----------------------------------------------------------------------------
# Kernels
# ----------------------------------------------------------------------------
def _pe_add_kernel(x_ref, pe_ref, o_ref):
    # eval mode: dropout is identity; pe broadcast over the folded batch dim
    o_ref[...] = (x_ref[...] + pe_ref[...][None, :, :]).astype(o_ref.dtype)


def _fmix32(x):
    """murmur3 32-bit finalizer — cheap VPU-only avalanche hash."""
    x = x ^ (x >> 16)
    x = x * jnp.uint32(0x85EBCA6B)
    x = x ^ (x >> 13)
    x = x * jnp.uint32(0xC2B2AE35)
    x = x ^ (x >> 16)
    return x


def _pe_add_dropout_kernel(seed_ref, x_ref, pe_ref, o_ref, *, rate, seq_len, dm):
    y = x_ref[...] + pe_ref[...][None, :, :]

    # Stateless per-element PRNG: hash(seed, global element index).
    # Pure jnp/lax integer ops -> lowers on TPU and in interpret mode,
    # and the stream is independent of the tiling (order-independent, so
    # safe with both grid axes marked "parallel").
    blk_b, blk_s, _ = y.shape
    b0 = pl.program_id(1) * blk_b
    s0 = pl.program_id(0) * blk_s
    bi = lax.broadcasted_iota(jnp.int32, y.shape, 0) + b0
    si = lax.broadcasted_iota(jnp.int32, y.shape, 1) + s0
    di = lax.broadcasted_iota(jnp.int32, y.shape, 2)
    idx = ((bi * seq_len + si) * dm + di).astype(jnp.uint32)
    seed_u = seed_ref[0].astype(jnp.uint32) * jnp.uint32(0x9E3779B9)
    bits = _fmix32(idx ^ seed_u)

    # keep element iff uniform >= rate  <=>  bits >= rate * 2^32 (saturated so
    # rate ~ 1.0 cannot wrap the uint32 threshold back to 0)
    threshold = jnp.uint32(min(int(round(rate * float(2 ** 32))), 2 ** 32 - 1))
    keep = bits >= threshold
    inv_keep = 1.0 / (1.0 - rate)
    o_ref[...] = jnp.where(keep, y * inv_keep, 0.0).astype(o_ref.dtype)


# ----------------------------------------------------------------------------
# Tiling
# ----------------------------------------------------------------------------
def _choose_blocks(B, S, D, itemsize):
    # seq tile: full extent when small (always legal), else 512 rows (multiple
    # of 8; a ragged last block is legal and handled by pl.cdiv / padding).
    block_s = S if S <= 512 else 512
    # Fold batch rows into each tile so small-S shapes are not grid-overhead
    # bound: target ~2 MiB per x tile.  Double-buffered (x, out, pe) is then
    # ~10 MiB worst case, under the 16 MiB default scoped VMEM on v5e
    # (32 MiB on v6e/v7x, 64 MiB physical on v7x).
    bytes_per_batch_row = block_s * D * itemsize
    target_bytes = 2 * 1024 * 1024
    block_b = max(1, min(B, target_bytes // bytes_per_batch_row))
    return int(block_b), int(block_s)


# ----------------------------------------------------------------------------
# Wrapper
# ----------------------------------------------------------------------------
def positional_encoding(x, pos_table, *, dropout_rate=0.1, training=False,
                        seed=0, alias_input=False):
    """x: [B, S, D], pos_table: [max_len, D] -> [B, S, D] (same dtype as x)."""
    B, S, D = x.shape
    assert pos_table.shape[1] == D and pos_table.shape[0] >= S
    pe = pos_table[:S].astype(x.dtype)                   # [S, D]

    rate = float(dropout_rate)
    apply_dropout = training and rate > 0.0
    if apply_dropout and rate >= 1.0:
        return jnp.zeros_like(x)                         # nn.Dropout(p=1.0)

    block_b, block_s = _choose_blocks(B, S, D, jnp.dtype(x.dtype).itemsize)
    # Batch is the innermost (fastest-varying) grid axis so the pe block index
    # (s, 0) is constant across consecutive steps -> Pallas skips re-fetching
    # the positional table per batch tile.
    grid = (pl.cdiv(S, block_s), pl.cdiv(B, block_b))
    x_spec = pl.BlockSpec((block_b, block_s, D), lambda s, b: (b, s, 0))
    pe_spec = pl.BlockSpec((block_s, D), lambda s, b: (s, 0))
    out_spec = pl.BlockSpec((block_b, block_s, D), lambda s, b: (b, s, 0))
    cparams = pltpu.CompilerParams(
        dimension_semantics=("parallel", "parallel"))
    out_shape = jax.ShapeDtypeStruct((B, S, D), x.dtype)

    if not apply_dropout:
        return pl.pallas_call(
            _pe_add_kernel,
            out_shape=out_shape,
            grid=grid,
            in_specs=[x_spec, pe_spec],
            out_specs=out_spec,
            compiler_params=cparams,
            input_output_aliases={0: 0} if alias_input else {},
        )(x, pe)

    kernel = functools.partial(_pe_add_dropout_kernel,
                               rate=rate, seq_len=S, dm=D)
    seed_arr = jnp.asarray([seed], dtype=jnp.int32)
    return pl.pallas_call(
        kernel,
        out_shape=out_shape,
        grid=grid,
        in_specs=[pl.BlockSpec(memory_space=pltpu.MemorySpace.SMEM),  # seed
                  x_spec, pe_spec],
        out_specs=out_spec,
        compiler_params=cparams,
        input_output_aliases={1: 0} if alias_input else {},
    )(seed_arr, x, pe)


# ----------------------------------------------------------------------------
# Demo / correctness check
# ----------------------------------------------------------------------------
if __name__ == "__main__":
    B, S = 2, 8
    max_len = 64

    key = jax.random.PRNGKey(0)
    x = jax.random.normal(key, (B, S, d_model), jnp.float32)
    pos_table = jnp.asarray(build_pos_table(max_len, d_model))

    # --- eval mode (dropout == identity at inference) ---
    out = positional_encoding(x, pos_table, dropout_rate=0.1, training=False)
    jax.block_until_ready(out)

    ref = x + pos_table[:S][None, :, :]
    assert out.shape == (B, S, d_model)
    assert jnp.allclose(out, ref, atol=1e-6, rtol=1e-6)

    # --- training mode (in-kernel hash-PRNG dropout, inverted scaling) ---
    rate = 0.1
    out_tr = positional_encoding(x, pos_table, dropout_rate=rate,
                                 training=True, seed=1234)
    jax.block_until_ready(out_tr)
    assert out_tr.shape == (B, S, d_model)

    scaled = ref / (1.0 - rate)
    is_zero = jnp.isclose(out_tr, 0.0, atol=1e-6)
    is_scaled = jnp.isclose(out_tr, scaled, atol=1e-5, rtol=1e-5)
    assert bool(jnp.all(is_zero | is_scaled))          # values are dropped or scaled
    keep_frac = float(jnp.mean(is_scaled.astype(jnp.float32)))
    assert 0.8 < keep_frac <= 1.0                      # ~90% kept

    print("KERNEL_OK")
</pallas_src>

<mosaic_0001>
module attributes {stable_mosaic.version = 11 : i64} {
  func.func @_pe_add_kernel(%arg0: i32, %arg1: i32, %arg2: memref<2x8x512xf32, #tpu.memory_space<vmem>>, %arg3: memref<8x512xf32, #tpu.memory_space<vmem>>, %arg4: memref<2x8x512xf32, #tpu.memory_space<vmem>>) attributes {dimension_semantics = [#tpu.dimension_semantics<parallel>, #tpu.dimension_semantics<parallel>], iteration_bounds = array<i64: 1, 1>, scalar_prefetch = 0 : i64, scratch_operands = 0 : i64, tpu.core_type = #tpu.core_type<tc>, window_params = [{transform_indices = @transform_0, window_bounds = array<i64: 2, 8, 512>}, {transform_indices = @transform_1, window_bounds = array<i64: 8, 512>}, {transform_indices = @transform_2, window_bounds = array<i64: 2, 8, 512>}]} {
    %c0 = arith.constant 0 : index
    %c0_0 = arith.constant 0 : index
    %c0_1 = arith.constant 0 : index
    %0 = vector.load %arg2[%c0, %c0_0, %c0_1] : memref<2x8x512xf32, #tpu.memory_space<vmem>>, vector<2x8x512xf32>
    %c0_2 = arith.constant 0 : index
    %c0_3 = arith.constant 0 : index
    %1 = vector.load %arg3[%c0_2, %c0_3] : memref<8x512xf32, #tpu.memory_space<vmem>>, vector<8x512xf32>
    %2 = vector.shape_cast %1 : vector<8x512xf32> to vector<1x8x512xf32>
    %3 = vector.broadcast %2 : vector<1x8x512xf32> to vector<2x8x512xf32>
    %4 = arith.addf %0, %3 : vector<2x8x512xf32>
    %c0_4 = arith.constant 0 : index
    %c0_5 = arith.constant 0 : index
    %c0_6 = arith.constant 0 : index
    %5 = vector.load %arg4[%c0_4, %c0_5, %c0_6] : memref<2x8x512xf32, #tpu.memory_space<vmem>>, vector<2x8x512xf32>
    tpu.vector_store %arg4[%c0_4, %c0_5, %c0_6], %4 {strides = array<i32>} : memref<2x8x512xf32, #tpu.memory_space<vmem>>, vector<2x8x512xf32>,
    return
  }
  func.func @transform_0(%arg0: i32, %arg1: i32) -> (i32, i32, i32) {
    %c0_i32 = arith.constant 0 : i32
    %c0_i32_0 = arith.constant 0 : i32
    return %arg1, %arg0, %c0_i32 : i32, i32, i32
  }
  func.func @transform_1(%arg0: i32, %arg1: i32) -> (i32, i32) {
    %c0_i32 = arith.constant 0 : i32
    %c0_i32_0 = arith.constant 0 : i32
    return %arg0, %c0_i32 : i32, i32
  }
  func.func @transform_2(%arg0: i32, %arg1: i32) -> (i32, i32, i32) {
    %c0_i32 = arith.constant 0 : i32
    %c0_i32_0 = arith.constant 0 : i32
    return %arg1, %arg0, %c0_i32 : i32, i32, i32
  }
}

</mosaic_0001>

<bundles_post_ra>
// kernel: tpu_custom_call.1
= control target key start
LH: loop header
LB: loop body
LE: loop exit
PB: predicated region body
PF: predicated region fallthrough
CT: control target
= control target key end

     0   :  { %7 = vsyncpa [#allocation3], 0  ;;  %s223_s0 = inlined_call_operand.hbm [shape: f32[2,8,512], index: 0, kind: input, shape index: {}]   ;;  %s224_s1 = inlined_call_operand.hbm [shape: f32[8,512], index: 1, kind: input, shape index: {}]   ;;  %s225_s2 = inlined_call_operand.hbm [shape: f32[2,8,512], index: 2, kind: output, shape index: {}]  }
   0x1   :  { %8 = vsyncpa [#allocation6], 0 }
   0x2   :  { %9 = vsyncpa [#allocation4], 0  ;;  %s161_s9 = smov [#allocation2]   ;;  %s89_s13 = scalar_lea.hbm %s223_s0, 1024 }
   0x3   :  { %s15_s10 = sshll.u32 %s161_s9, 4  ;;  %p90_p0 = scmp.ne.s32.totalorder %s223_s0, %s89_s13  ;;  %s16_s10 = int_to_ptr.vmem [resolvable:$true] %s15_s10 }
   0x4   :  { %p93_p1 = scmp.lt.u32.totalorder %s89_s13, %s223_s0 }
   0x6   :  { %p95_p2 = pnand %p93_p1, %p90_p0 }
   0x8   :  { %98 = shalt.err (!%p95_p2)
}
   0x9   :  { %s99_s18 = scalar_lea.vmem %s16_s10, 1024  ;;  %p104_p4 = scmp.lt.s32.totalorder %s16_s10, %s16_s10 }
   0xa   :  { %p100_p3 = scmp.ne.s32.totalorder %s16_s10, %s99_s18  ;;  %p105_p5 = scmp.lt.s32.totalorder %s99_s18, %s99_s18 }
   0xc   :  { %p106_p6 = por %p105_p5, %p104_p4 }
   0xe   :  { %p107_p7 = pnand %p106_p6, %p100_p3 }
  0x10   :  { %110 = shalt.err (!%p107_p7)
}
  0x11   :  { %s162_s19 = smov 512   ;;  %s163_s20 = smov 32  }
  0x12   :  { %21 = dma.hbm_to_vmem [thread:$0]  %s223_s0, 1024, %s16_s10, [#allocation3], %s162_s19, %s162_s19, %s163_s20  }
  0x13   :  { %s164_s23 = smov [#allocation5]   ;;  %s111_s27 = scalar_lea.hbm %s224_s1, 512 }
  0x14   :  { %s28_s24 = sshll.u32 %s164_s23, 4  ;;  %p112_p8 = scmp.ne.s32.totalorder %s224_s1, %s111_s27  ;;  %s29_s24 = int_to_ptr.vmem [resolvable:$true] %s28_s24 }
  0x15   :  { %p115_p9 = scmp.lt.u32.totalorder %s111_s27, %s224_s1 }
  0x17   :  { %p117_p10 = pnand %p115_p9, %p112_p8 }
  0x19   :  { %120 = shalt.err (!%p117_p10)
}
  0x1a   :  { %s121_s4 = scalar_lea.vmem %s29_s24, 512  ;;  %p126_p12 = scmp.lt.s32.totalorder %s29_s24, %s29_s24 }
  0x1b   :  { %p122_p11 = scmp.ne.s32.totalorder %s29_s24, %s121_s4  ;;  %p127_p13 = scmp.lt.s32.totalorder %s121_s4, %s121_s4 }
  0x1d   :  { %p128_p0 = por %p127_p13, %p126_p12 }
  0x1f   :  { %p129_p1 = pnand %p128_p0, %p122_p11 }
  0x21   :  { %132 = shalt.err (!%p129_p1)
}
  0x22   :  { %31 = dma.hbm_to_vmem [thread:$0]  %s224_s1, 512, %s29_s24, [#allocation6]  }
  0x23   :  { %155 = dma.done.wait [#allocation3], 1024  }
  0x24   :  { %156 = vsyncadd [#allocation3], 4294966272 }
  0x25   :  { %157 = dma.done.wait [#allocation6], 512  }
  0x26   :  { %158 = vsyncadd [#allocation6], 4294966784  ;;  %v38_v0 = vld [vmem:[#allocation2] sm:$0xff]  ;;  %v39_v2 = vld [vmem:[#allocation2 + $0x8] sm:$0xff]  ;;  %s165_s6 = smov [#allocation7]  }
  0x27   :  { %v46_v1 = vld [vmem:[#allocation5] sm:$0xff]  ;;  %v47_v4 = vld [vmem:[#allocation5 + $0x8] sm:$0xff]  ;;  %v40_v5 = vld [vmem:[#allocation2 + $0x10] sm:$0xff]  ;;  %s71_s7 = sshll.u32 %s165_s6, 4  ;;  %s72_s7 = int_to_ptr.vmem [resolvable:$true] %s71_s7 }
  0x28   :  { %v50_v3 = vadd.f32 %v46_v1, %v38_v0  ;;  %v48_v6 = vld [vmem:[#allocation5 + $0x10] sm:$0xff]  ;;  %v51_v7 = vadd.f32 %v47_v4, %v39_v2  ;;  %v41_v9 = vld [vmem:[#allocation2 + $0x18] sm:$0xff]  ;;  %v42_v11 = vld [vmem:[#allocation2 + $0x20] sm:$0xff]  ;;  %s133_s1 = scalar_lea.vmem %s72_s7, 1024  ;;  %p138_p3 = scmp.lt.s32.totalorder %s72_s7, %s72_s7 }
  0x29   :  { %v52_v8 = vadd.f32 %v48_v6, %v40_v5  ;;  %v49_v10 = vld [vmem:[#allocation5 + $0x18] sm:$0xff]  ;;  %v54_v13 = vadd.f32 %v46_v1, %v42_v11  ;;  %v43_v14 = vld [vmem:[#allocation2 + $0x28] sm:$0xff]  ;;  %v44_v15 = vld [vmem:[#allocation2 + $0x30] sm:$0xff]  ;;  %p134_p2 = scmp.ne.s32.totalorder %s72_s7, %s133_s1  ;;  %p139_p4 = scmp.lt.s32.totalorder %s133_s1, %s133_s1 }
  0x2a   :  { %58 = vst [vmem:[#allocation7] sm:$0xff] %v50_v3  ;;  %v53_v12 = vadd.f32 %v49_v10, %v41_v9  ;;  %v45_v16 = vld [vmem:[#allocation2 + $0x38] sm:$0xff]  ;;  %59 = vst [vmem:[#allocation7 + $0x8] sm:$0xff] %v51_v7  ;;  %v55_v17 = vadd.f32 %v47_v4, %v43_v14  ;;  %v56_v18 = vadd.f32 %v48_v6, %v44_v15 }
  0x2b   :  { %60 = vst [vmem:[#allocation7 + $0x10] sm:$0xff] %v52_v8  ;;  %v57_v19 = vadd.f32 %v49_v10, %v45_v16  ;;  %62 = vst [vmem:[#allocation7 + $0x20] sm:$0xff] %v54_v13  ;;  %p140_p5 = por %p139_p4, %p138_p3 }
  0x2c   :  { %61 = vst [vmem:[#allocation7 + $0x18] sm:$0xff] %v53_v12  ;;  %63 = vst [vmem:[#allocation7 + $0x28] sm:$0xff] %v55_v17 }
  0x2d   :  { %64 = vst [vmem:[#allocation7 + $0x30] sm:$0xff] %v56_v18  ;;  %65 = vst [vmem:[#allocation7 + $0x38] sm:$0xff] %v57_v19  ;;  %p141_p6 = pnand %p140_p5, %p134_p2 }
  0x2f   :  { %144 = shalt.err (!%p141_p6)
}
  0x30   :  { %s145_s10 = scalar_lea.hbm %s225_s2, 1024 }
  0x31   :  { %p146_p7 = scmp.ne.s32.totalorder %s225_s2, %s145_s10  ;;  %p149_p8 = scmp.lt.u32.totalorder %s145_s10, %s225_s2 }
  0x33   :  { %p151_p9 = pnand %p149_p8, %p146_p7 }
  0x35   :  { %154 = shalt.err (!%p151_p9)
}
  0x36   :  { %77 = dma.vmem_to_hbm [thread:$0]  %s72_s7, 1024, %s225_s2, [#allocation4], %s162_s19, %s162_s19, %s163_s20  }
  0x37   :  { %159 = dma.done.wait [#allocation4], 1024  }
  0x38   :  { %160 = vsyncadd [#allocation4], 4294966272 }
  0x39   :  { %81 = vsyncpa [#allocation3], 1 }
  0x3a   :  { %82 = vsyncpa [#allocation6], 1 }
  0x3b   :  { %83 = vsyncpa [#allocation4], 1 }

</bundles_post_ra>
